<compile_context>
chip_gen: v5e
topology: v5e:2x2
jax: 0.10.0
libtpu: 0.0.40
codegen_flags: <defaults>
</compile_context>

<pallas_src>
import functools

import jax
import jax.numpy as jnp
from jax.experimental import pallas as pl
from jax.experimental.pallas import tpu as pltpu


def _round_up(x, m):
    return ((x + m - 1) // m) * m


def _hash_u32(x):
    """Stateless fmix32-style hash (interpret-mode dropout fallback only)."""
    x = x ^ (x >> jnp.uint32(16))
    x = x * jnp.uint32(0x7FEB352D)
    x = x ^ (x >> jnp.uint32(15))
    x = x * jnp.uint32(0x846CA68B)
    x = x ^ (x >> jnp.uint32(16))
    return x


def _prenet_kernel(seed_ref, x_ref, w1_ref, b1_ref, w2_ref, b2_ref, o_ref, *,
                   drop_rate, training, compute_dtype, use_hw_prng):
    """One row-tile of the PreNet forward pass."""
    rows = x_ref.shape[0]
    units = o_ref.shape[1]
    apply_dropout = bool(training) and drop_rate > 0.0
    # Must match the wrapper: when True, the layer-1 1/(1-p) scale was folded
    # into w2 host-side, so layer-1 dropout is a pure select.
    scale_folded = apply_dropout and 0.0 < drop_rate < 1.0

    if apply_dropout:
        threshold = jnp.uint32(min(int(drop_rate * 4294967296.0), 4294967295))
        keep_scale = (jnp.float32(1.0 / (1.0 - drop_rate)) if drop_rate < 1.0
                      else jnp.float32(0.0))
        if use_hw_prng:
            # One seed per grid step -> adjacent tiles are decorrelated.
            pltpu.prng_seed(seed_ref[0], pl.program_id(0))

    def keep_mask(layer_salt):
        """Lazy per-layer (rows, units) Bernoulli keep mask."""
        if use_hw_prng:
            bits = pltpu.prng_random_bits((rows, units))
            if bits.dtype != jnp.uint32:
                bits = pltpu.bitcast(bits, jnp.uint32)
        else:
            # Counter-based hash; portable to interpret mode / CPU.
            ri = jax.lax.broadcasted_iota(jnp.int32, (rows, units), 0)
            ci = jax.lax.broadcasted_iota(jnp.int32, (rows, units), 1)
            idx = (ri * units + ci).astype(jnp.uint32)
            salt = _hash_u32(
                seed_ref[0].astype(jnp.uint32) * jnp.uint32(0x9E3779B9)
                + pl.program_id(0).astype(jnp.uint32) * jnp.uint32(0x85EBCA6B)
                + jnp.uint32(layer_salt))
            bits = _hash_u32(idx ^ salt)
        return bits >= threshold

    x = x_ref[...].astype(compute_dtype)

    # dense1: Linear -> ReLU -> Dropout   (f32 accumulation on the MXU)
    h1 = jnp.dot(x, w1_ref[...], preferred_element_type=jnp.float32) + b1_ref[...]
    h1 = jnp.maximum(h1, 0.0)
    if apply_dropout:
        if scale_folded:
            h1 = jnp.where(keep_mask(1), h1, jnp.float32(0.0))
        else:
            h1 = jnp.where(keep_mask(1), h1 * keep_scale, jnp.float32(0.0))

    # dense2: Linear -> ReLU -> Dropout
    h2 = jnp.dot(h1.astype(compute_dtype), w2_ref[...],
                 preferred_element_type=jnp.float32) + b2_ref[...]
    h2 = jnp.maximum(h2, 0.0)
    if apply_dropout:
        h2 = jnp.where(keep_mask(2), h2 * keep_scale, jnp.float32(0.0))

    o_ref[...] = h2.astype(o_ref.dtype)


def prenet_forward(x, w1, b1, w2, b2, *, drop_rate, seed=0, training=True,
                   row_tile=1024, compute_dtype=jnp.float32, out_dtype=None,
                   use_hw_prng=None):
    """x: (B, T, in_features) -> (B, T, units).

    Weights are (in_features, out_features) (i.e. PyTorch weight.T).
    Output dtype defaults to compute_dtype: pass compute_dtype=jnp.bfloat16 on
    v6e/v7x to halve HBM traffic when downstream accepts bf16.
    """
    B, T, f_in = x.shape
    units = w1.shape[1]
    M = B * T
    drop_rate = float(drop_rate)
    out_dtype = compute_dtype if out_dtype is None else out_dtype
    if use_hw_prng is None:
        use_hw_prng = jax.default_backend() == "tpu"

    # Row tile: multiple of 16 (valid for bf16 (16,128) tiles), large by
    # default to amortize ~0.35us/step overhead, clamped for tiny M, and split
    # so >=2 grid steps exist when possible (v7x dual-TC "parallel" sharding).
    row_tile = max(16, min(int(row_tile), _round_up(M, 16)))
    row_tile = _round_up(row_tile, 16)
    if M > 16 and -(-M // row_tile) < 2:
        row_tile = _round_up(-(-M // 2), 16)
    num_tiles = -(-M // row_tile)

    # No padded copies of the activations: blocks whose minor dim equals the
    # full array dim are legal, and Pallas masks the ragged last row tile.
    x2 = x.reshape(M, f_in)                 # kernel casts to compute_dtype
    w1c = w1.astype(compute_dtype)
    w2c = w2.astype(compute_dtype)
    apply_dropout = bool(training) and drop_rate > 0.0
    if apply_dropout and 0.0 < drop_rate < 1.0:
        # Fold the layer-1 inverted-dropout scale into w2 (one-time, host
        # side) so the in-kernel layer-1 dropout is a pure select.
        w2c = w2c * jnp.asarray(1.0 / (1.0 - drop_rate), compute_dtype)
    b1r = b1.reshape(1, units).astype(jnp.float32)
    b2r = b2.reshape(1, units).astype(jnp.float32)
    seed_arr = jnp.asarray([seed], dtype=jnp.int32)

    kernel = functools.partial(_prenet_kernel,
                               drop_rate=drop_rate,
                               training=bool(training),
                               compute_dtype=compute_dtype,
                               use_hw_prng=bool(use_hw_prng))

    # TODO(synk): single-buffer the constant weight blocks via
    # pipeline_mode=pl.Buffered(1) for very wide prenets on v7x; with a
    # constant index_map Pallas already skips re-fetching them across steps.
    grid_spec = pltpu.PrefetchScalarGridSpec(
        num_scalar_prefetch=1,                     # seed lands in SMEM
        grid=(num_tiles,),
        in_specs=[
            pl.BlockSpec((row_tile, f_in), lambda i, seed: (i, 0)),  # x tile
            pl.BlockSpec((f_in, units),    lambda i, seed: (0, 0)),  # W1
            pl.BlockSpec((1, units),       lambda i, seed: (0, 0)),  # b1
            pl.BlockSpec((units, units),   lambda i, seed: (0, 0)),  # W2
            pl.BlockSpec((1, units),       lambda i, seed: (0, 0)),  # b2
        ],
        out_specs=pl.BlockSpec((row_tile, units), lambda i, seed: (i, 0)),
    )

    # Explicit scoped-VMEM budget: double-buffered x/out tiles + resident
    # weights + in-kernel temporaries, with 2x headroom (v5e default is 16 MiB).
    itemsize = lambda dt: jnp.dtype(dt).itemsize
    vmem_est = (2 * row_tile * f_in * itemsize(x2.dtype)
                + 2 * row_tile * units * itemsize(out_dtype)
                + 2 * (f_in * units + units * units) * itemsize(compute_dtype)
                + 4 * units * 4
                + 6 * row_tile * units * 4)
    vmem_limit = int(min(64 * 1024 * 1024, max(16 * 1024 * 1024, 2 * vmem_est)))

    out = pl.pallas_call(
        kernel,
        out_shape=jax.ShapeDtypeStruct((M, units), out_dtype),
        grid_spec=grid_spec,
        compiler_params=pltpu.CompilerParams(
            # Row tiles are fully independent -> v7x can split them across its
            # two TensorCores; neutral on v5e/v6e.
            dimension_semantics=("parallel",),
            vmem_limit_bytes=vmem_limit),
    )(seed_arr, x2, w1c, b1r, w2c, b2r)

    return out.reshape(B, T, units)


def prenet_ref(x, w1, b1, w2, b2):
    """Pure-JAX reference (eval mode: dropout is identity)."""
    h1 = jnp.maximum(x @ w1 + b1, 0.0)
    h2 = jnp.maximum(h1 @ w2 + b2, 0.0)
    return h2


def _xavier_uniform(key, fan_in, fan_out):
    limit = (6.0 / (fan_in + fan_out)) ** 0.5
    return jax.random.uniform(key, (fan_in, fan_out), jnp.float32,
                              minval=-limit, maxval=limit)


if __name__ == "__main__":
    # Small shapes consistent with the module: batch=2, seq=8, in=32, units=32.
    B, T, in_features, units = 2, 8, 32, 32
    drop_rate = 0.5

    key = jax.random.PRNGKey(0)
    kx, kw1, kw2 = jax.random.split(key, 3)

    x = jax.random.normal(kx, (B, T, in_features), dtype=jnp.float32)
    w1 = _xavier_uniform(kw1, in_features, units)   # (in, out) == PyTorch W.T
    b1 = jnp.zeros((units,), dtype=jnp.float32)
    w2 = _xavier_uniform(kw2, units, units)
    b2 = jnp.zeros((units,), dtype=jnp.float32)

    # Eval mode, f32 path: must match the pure-JAX reference tightly.
    out_eval = prenet_forward(x, w1, b1, w2, b2, drop_rate=drop_rate,
                              training=False, compute_dtype=jnp.float32)
    out_eval = jax.block_until_ready(out_eval)
    ref = prenet_ref(x, w1, b1, w2, b2)
    assert out_eval.shape == (B, T, units)
    assert jnp.allclose(out_eval, ref, atol=1e-5, rtol=1e-5)

    # Eval mode, bf16 compute + bf16 output (perf path on v6e/v7x): loose tol.
    out_bf16 = prenet_forward(x, w1, b1, w2, b2, drop_rate=drop_rate,
                              training=False, compute_dtype=jnp.bfloat16)
    out_bf16 = jax.block_until_ready(out_bf16)
    assert out_bf16.dtype == jnp.bfloat16
    assert jnp.allclose(out_bf16.astype(jnp.float32), ref, atol=1e-1, rtol=1e-1)

    # Training mode: in-kernel inverted dropout (hardware PRNG on TPU).
    # TODO(synk): the random stream differs from torch.nn.Dropout's RNG; the
    # semantics (Bernoulli keep-prob 1-p, scale 1/(1-p)) are reproduced exactly.
    out_train = prenet_forward(x, w1, b1, w2, b2, drop_rate=drop_rate,
                               seed=1234, training=True,
                               compute_dtype=jnp.float32)
    out_train = jax.block_until_ready(out_train)
    assert out_train.shape == (B, T, units)
    assert bool(jnp.all(jnp.isfinite(out_train)))
    assert not bool(jnp.allclose(out_train, out_eval))   # dropout did something

    print("KERNEL_OK")
</pallas_src>

<mosaic_0001>
module attributes {stable_mosaic.version = 11 : i64} {
  func.func @_prenet_kernel(%arg0: i32, %arg1: memref<1xi32, #tpu.memory_space<smem>>, %arg2: memref<16x32xf32, #tpu.memory_space<vmem>>, %arg3: memref<32x32xf32, #tpu.memory_space<vmem>>, %arg4: memref<1x32xf32, #tpu.memory_space<vmem>>, %arg5: memref<32x32xf32, #tpu.memory_space<vmem>>, %arg6: memref<1x32xf32, #tpu.memory_space<vmem>>, %arg7: memref<16x32xf32, #tpu.memory_space<vmem>>) attributes {dimension_semantics = [#tpu.dimension_semantics<parallel>], iteration_bounds = array<i64: 1>, scalar_prefetch = 1 : i64, scratch_operands = 0 : i64, tpu.core_type = #tpu.core_type<tc>, window_params = [{transform_indices = @transform_0, window_bounds = array<i64: 16, 32>}, {pipeline_mode = #tpu.pipeline_mode<synchronous>, transform_indices = @transform_1, window_bounds = array<i64: 32, 32>}, {pipeline_mode = #tpu.pipeline_mode<synchronous>, transform_indices = @transform_2, window_bounds = array<i64: 1, 32>}, {pipeline_mode = #tpu.pipeline_mode<synchronous>, transform_indices = @transform_3, window_bounds = array<i64: 32, 32>}, {pipeline_mode = #tpu.pipeline_mode<synchronous>, transform_indices = @transform_4, window_bounds = array<i64: 1, 32>}, {transform_indices = @transform_5, window_bounds = array<i64: 16, 32>}]} {
    %c0 = arith.constant 0 : index
    %c0_0 = arith.constant 0 : index
    %0 = vector.load %arg2[%c0, %c0_0] : memref<16x32xf32, #tpu.memory_space<vmem>>, vector<16x32xf32>
    %c0_1 = arith.constant 0 : index
    %c0_2 = arith.constant 0 : index
    %1 = vector.load %arg3[%c0_1, %c0_2] : memref<32x32xf32, #tpu.memory_space<vmem>>, vector<32x32xf32>
    %cst = arith.constant dense<0.000000e+00> : vector<16x32xf32>
    %2 = tpu.matmul %0, %1, %cst {dimension_numbers = #tpu.dot_dimension_numbers<[1], [0], [0], [1], [0, 0, 1, 1], [], []>} : vector<16x32xf32>, vector<32x32xf32>, vector<16x32xf32> -> vector<16x32xf32>
    %c0_3 = arith.constant 0 : index
    %c0_4 = arith.constant 0 : index
    %3 = vector.load %arg4[%c0_3, %c0_4] : memref<1x32xf32, #tpu.memory_space<vmem>>, vector<1x32xf32>
    %4 = vector.broadcast %3 : vector<1x32xf32> to vector<16x32xf32>
    %5 = arith.addf %2, %4 : vector<16x32xf32>
    %cst_5 = arith.constant 0.000000e+00 : f32
    %6 = vector.broadcast %cst_5 : f32 to vector<16x32xf32>
    %7 = arith.maximumf %5, %6 : vector<16x32xf32>
    %c0_6 = arith.constant 0 : index
    %c0_7 = arith.constant 0 : index
    %8 = vector.load %arg5[%c0_6, %c0_7] : memref<32x32xf32, #tpu.memory_space<vmem>>, vector<32x32xf32>
    %cst_8 = arith.constant dense<0.000000e+00> : vector<16x32xf32>
    %9 = tpu.matmul %7, %8, %cst_8 {dimension_numbers = #tpu.dot_dimension_numbers<[1], [0], [0], [1], [0, 0, 1, 1], [], []>} : vector<16x32xf32>, vector<32x32xf32>, vector<16x32xf32> -> vector<16x32xf32>
    %c0_9 = arith.constant 0 : index
    %c0_10 = arith.constant 0 : index
    %10 = vector.load %arg6[%c0_9, %c0_10] : memref<1x32xf32, #tpu.memory_space<vmem>>, vector<1x32xf32>
    %11 = vector.broadcast %10 : vector<1x32xf32> to vector<16x32xf32>
    %12 = arith.addf %9, %11 : vector<16x32xf32>
    %cst_11 = arith.constant 0.000000e+00 : f32
    %13 = vector.broadcast %cst_11 : f32 to vector<16x32xf32>
    %14 = arith.maximumf %12, %13 : vector<16x32xf32>
    %c0_12 = arith.constant 0 : index
    %c0_13 = arith.constant 0 : index
    %15 = vector.load %arg7[%c0_12, %c0_13] : memref<16x32xf32, #tpu.memory_space<vmem>>, vector<16x32xf32>
    tpu.vector_store %arg7[%c0_12, %c0_13], %14 {strides = array<i32>} : memref<16x32xf32, #tpu.memory_space<vmem>>, vector<16x32xf32>,
    return
  }
  func.func @transform_0(%arg0: i32, %arg1: memref<1xi32, #tpu.memory_space<smem>>) -> (i32, i32) {
    %c0_i32 = arith.constant 0 : i32
    %c0_i32_0 = arith.constant 0 : i32
    return %arg0, %c0_i32 : i32, i32
  }
  func.func @transform_1(%arg0: i32, %arg1: memref<1xi32, #tpu.memory_space<smem>>) -> (i32, i32) {
    %c0_i32 = arith.constant 0 : i32
    %c0_i32_0 = arith.constant 0 : i32
    %c0_i32_1 = arith.constant 0 : i32
    return %c0_i32, %c0_i32_0 : i32, i32
  }
  func.func @transform_2(%arg0: i32, %arg1: memref<1xi32, #tpu.memory_space<smem>>) -> (i32, i32) {
    %c0_i32 = arith.constant 0 : i32
    %c0_i32_0 = arith.constant 0 : i32
    %c0_i32_1 = arith.constant 0 : i32
    return %c0_i32, %c0_i32_0 : i32, i32
  }
  func.func @transform_3(%arg0: i32, %arg1: memref<1xi32, #tpu.memory_space<smem>>) -> (i32, i32) {
    %c0_i32 = arith.constant 0 : i32
    %c0_i32_0 = arith.constant 0 : i32
    %c0_i32_1 = arith.constant 0 : i32
    return %c0_i32, %c0_i32_0 : i32, i32
  }
  func.func @transform_4(%arg0: i32, %arg1: memref<1xi32, #tpu.memory_space<smem>>) -> (i32, i32) {
    %c0_i32 = arith.constant 0 : i32
    %c0_i32_0 = arith.constant 0 : i32
    %c0_i32_1 = arith.constant 0 : i32
    return %c0_i32, %c0_i32_0 : i32, i32
  }
  func.func @transform_5(%arg0: i32, %arg1: memref<1xi32, #tpu.memory_space<smem>>) -> (i32, i32) {
    %c0_i32 = arith.constant 0 : i32
    %c0_i32_0 = arith.constant 0 : i32
    return %arg0, %c0_i32 : i32, i32
  }
}

</mosaic_0001>

<bundles_post_ra>
// kernel: tpu_custom_call.1
= control target key start
LH: loop header
LB: loop body
LE: loop exit
PB: predicated region body
PF: predicated region fallthrough
CT: control target
= control target key end

     0   :  { %12 = vsyncpa [#allocation5], 0  ;;  %s372_s0 = inlined_call_operand.<no memory space> [shape: s32[1], index: 0, kind: input, shape index: {}]   ;;  %s373_s1 = inlined_call_operand.hbm [shape: f32[16,32], index: 1, kind: input, shape index: {}]   ;;  %s374_s2 = inlined_call_operand.hbm [shape: f32[32,32], index: 2, kind: input, shape index: {}]   ;;  %s375_s3 = inlined_call_operand.vmem [shape: f32[1,32], index: 3, kind: input, shape index: {}]   ;;  %s376_s4 = inlined_call_operand.hbm [shape: f32[32,32], index: 4, kind: input, shape index: {}]   ;;  %s377_s5 = inlined_call_operand.vmem [shape: f32[1,32], index: 5, kind: input, shape index: {}]   ;;  %s378_s6 = inlined_call_operand.hbm [shape: f32[16,32], index: 6, kind: output, shape index: {}]  }
   0x1   :  { %13 = vsyncpa [#allocation8], 0 }
   0x2   :  { %14 = vsyncpa [#allocation6], 0  ;;  %s32_s22 = sshll.u32 %s374_s2, 4  ;;  %s295_s23 = smov [#allocation7]   ;;  %s33_s22 = int_to_ptr.hbm [resolvable:$true] %s32_s22 }
   0x3   :  { %s34_s24 = sshll.u32 %s295_s23, 4  ;;  %s19_s27 = sshll.u32 %s373_s1, 4  ;;  %s35_s24 = int_to_ptr.vmem [resolvable:$true] %s34_s24  ;;  %s20_s27 = int_to_ptr.hbm [resolvable:$true] %s19_s27 }
   0x4   :  { %s296_s28 = smov 128   ;;  %s297_s29 = smov 8  }
   0x5   :  { %40 = dma.hbm_to_vmem [thread:$0]  %s33_s22, 512, %s35_s24, [#allocation8], %s296_s28, %s296_s28, %s297_s29  }
   0x6   :  { %s298_s30 = smov [#allocation4]   ;;  %s47_s2 = sshll.u32 %s376_s4, 4  ;;  %s48_s2 = int_to_ptr.hbm [resolvable:$true] %s47_s2 }
   0x7   :  { %s21_s7 = sshll.u32 %s298_s30, 4  ;;  %s299_s1 = smov [#allocation9]   ;;  %s22_s7 = int_to_ptr.vmem [resolvable:$true] %s21_s7 }
   0x8   :  { %27 = dma.hbm_to_vmem [thread:$0]  %s20_s27, 256, %s22_s7, [#allocation5], %s296_s28, %s296_s28, %s297_s29  }
   0x9   :  { %s49_s10 = sshll.u32 %s299_s1, 4  ;;  %s50_s10 = int_to_ptr.vmem [resolvable:$true] %s49_s10 }
   0xa   :  { %55 = dma.hbm_to_vmem [thread:$0]  %s48_s2, 512, %s50_s10, [#allocation8], %s296_s28, %s296_s28, %s297_s29  }
   0xb   :  { %289 = dma.done.wait [#allocation5], 256  }
   0xc   :  { %290 = vsyncadd [#allocation5], 4294967040 }
   0xd   :  { %291 = dma.done.wait [#allocation8], 1024  }
   0xe   :  { %292 = vsyncadd [#allocation8], 4294966272  ;;  %v75_v0 = vld [vmem:[#allocation7 + $0x18] sm:$0xff]  ;;  %v74_v1 = vld [vmem:[#allocation7 + $0x10] sm:$0xff]  ;;  %vm80_vm0 = vcmask 261120   ;;  %s159_s17 = sshll.u32 %s378_s6, 4  ;;  %s160_s17 = int_to_ptr.hbm [resolvable:$true] %s159_s17 }
   0xf   :  { %177 = vmatpush.msra.mxu2 %v75_v0  ;;  %99 = vmatpush.msra.mxu0 %v75_v0  ;;  %v73_v2 = vld [vmem:[#allocation7 + $0x8] sm:$0xff]  ;;  %v115_v3 = vld [vmem:[#allocation9 + $0x18] sm:$0xff]  ;;  %v72_v4 = vld [vmem:[#allocation7] sm:$0xff] }
  0x10   :  { %181 = vmatpush.msra.mxu3 %v115_v3  ;;  %138 = vmatpush.msra.mxu1 %v115_v3  ;;  %v71_v5 = vld [vmem:[#allocation4 + $0x8] sm:$0xff]  ;;  %v70_v6 = vld [vmem:[#allocation4] sm:$0xff]  ;;  %v113_v8 = vld [vmem:[#allocation9 + $0x8] sm:$0xff] }
  0x11   :  { %178 = vmatpush.msra.mxu2 %v74_v1  ;;  %100 = vmatpush.msra.mxu0 %v74_v1  ;;  %v114_v7 = vld [vmem:[#allocation9 + $0x10] sm:$0xff]  ;;  %v112_v9 = vld [vmem:[#allocation9] sm:$0xff] }
  0x12   :  { %182 = vmatpush.msra.mxu3 %v114_v7  ;;  %139 = vmatpush.msra.mxu1 %v114_v7  ;;  %v191_v10 = vld [vmem:[%s375_s3] ss:$0 sm:$0xff]  ;;  %s300_s3 = smov [#allocation10]  }
  0x13   :  { %179 = vmatpush.msra.mxu2 %v73_v2  ;;  %101 = vmatpush.msra.mxu0 %v73_v2  ;;  %v192_v17 = vld [vmem:[%s377_s5] ss:$0 sm:$0xff]  ;;  %s157_s14 = sshll.u32 %s300_s3, 4  ;;  %s158_s14 = int_to_ptr.vmem [resolvable:$true] %s157_s14 }
  0x14   :  { %183 = vmatpush.msra.mxu3 %v113_v8  ;;  %140 = vmatpush.msra.mxu1 %v113_v8 }
  0x15   :  { %180 = vmatpush.msra.mxu2 %v72_v4  ;;  %102 = vmatpush.msra.mxu0 %v72_v4 }
  0x16   :  { %174 = vmatmul.msk.f32.vlgmr.msra.gmra.mxu2 %vm80_vm0, %v71_v5  ;;  %173 = vmatmul.msk.f32.vlgmr.msra.gmra.mxu0 %vm80_vm0, %v70_v6 }
  0x17   :  { %184 = vmatpush.msra.mxu3 %v112_v9  ;;  %141 = vmatpush.msra.mxu1 %v112_v9 }
  0x93   :  { %v104_v11 = vpop.f32.mrf.mxu0 }
  0x94   :  { %v105_v12 = vadd.f32 %v191_v10, %v104_v11 }
  0x96   :  { %v110_v13 = vmax.f32 %v105_v12, 0.0 }
  0x98   :  { %175 = vmatmul.msk.f32.vlgmr.msra.gmra.mxu1 %vm80_vm0, %v110_v13 }
  0x99   :  { %v107_v14 = vpop.f32.mrf.mxu2 }
  0x9a   :  { %v108_v15 = vadd.f32 %v191_v10, %v107_v14 }
  0x9c   :  { %v111_v16 = vmax.f32 %v108_v15, 0.0 }
  0x9e   :  { %176 = vmatmul.msk.f32.vlgmr.msra.gmra.mxu3 %vm80_vm0, %v111_v16 }
 0x115   :  { %v143_v18 = vpop.f32.mrf.mxu1 }
 0x116   :  { %v144_v19 = vadd.f32 %v192_v17, %v143_v18 }
 0x118   :  { %v149_v20 = vmax.f32 %v144_v19, 0.0 }
 0x11a   :  { %151 = vst.msk [vmem:[#allocation10] sm:$0xff] %vm80_vm0, %v149_v20 }
 0x121   :  { %v146_v21 = vpop.f32.mrf.mxu3 }
 0x122   :  { %v147_v22 = vadd.f32 %v192_v17, %v146_v21 }
 0x124   :  { %v150_v23 = vmax.f32 %v147_v22, 0.0 }
 0x126   :  { %152 = vst.msk [vmem:[#allocation10 + $0x8] sm:$0xff] %vm80_vm0, %v150_v23 }
 0x127   :  { %165 = dma.vmem_to_hbm [thread:$0]  %s158_s14, 256, %s160_s17, [#allocation6], %s296_s28, %s296_s28, %s297_s29  }
 0x128   :  { %293 = dma.done.wait [#allocation6], 256  }
 0x129   :  { %294 = vsyncadd [#allocation6], 4294967040 }
 0x12a   :  { %170 = vsyncpa [#allocation5], 1 }
 0x12b   :  { %171 = vsyncpa [#allocation8], 1 }
 0x12c   :  { %172 = vsyncpa [#allocation6], 1 }

</bundles_post_ra>
